<compile_context>
chip_gen: v7x
topology: tpu7x:2x2x1
jax: 0.10.0
libtpu: 0.0.40
codegen_flags: <defaults>
</compile_context>

<pallas_src>
import functools

import jax
import jax.numpy as jnp
from jax.experimental import pallas as pl
from jax.experimental.pallas import tpu as pltpu


def autopad(k, p=None):
    if p is None:
        p = k // 2 if isinstance(k, int) else [x // 2 for x in k]
    return p


def conv_forward(x_nchw, weight, gamma, beta, *, k, s=1, p=None, g=1, eps=1e-5):
    """Forward of Conv: conv2d(bias=False) + BN(train batch stats) + LeakyReLU(0.1).

    x_nchw : (N, C1, H, W) float32
    weight : (C2, C1, k, k) float32
    gamma, beta : (C2,) float32
    Returns (N, C2, Ho, Wo) float32 (NCHW).
    """
    assert isinstance(k, int) and g == 1, "grouped / non-square conv not used in this config"
    p = autopad(k, p)
    N, C1, H, W = x_nchw.shape
    C2 = weight.shape[0]
    Ho = (H + 2 * p - k) // s + 1
    Wo = (W + 2 * p - k) // s + 1
    # Implicit-GEMM path: stride-1 "same" convs only (covers module default k=1,s=1).
    assert s == 1 and Wo == W and Ho == H, \
        "TODO(synk): strided/valid convs need strided band slicing + row-band tiling"

    Mi = Ho * Wo                                        # lane dim per image (>=128 for real sizes)
    back = max(0, (k - 1) - p)
    Lf = (H + 2 * p) * W + p + back                     # flattened padded-image length

    # ---- cheap layout glue (bf16, ~1x input volume; no k^2 im2col blow-up) ----
    xv = jnp.pad(x_nchw.astype(jnp.bfloat16), ((0, 0), (0, 0), (p, p), (0, 0)))
    x_flat = xv.reshape(N, C1, (H + 2 * p) * W)
    x_flat = jnp.pad(x_flat, ((0, 0), (0, 0), (p, back)))            # (N, C1, Lf)

    # weights as (k*k, C2, C1): each tap is a tiny resident (C2, C1) slice in-kernel.
    w_taps = jnp.transpose(weight, (2, 3, 0, 1)).reshape(k * k, C2, C1).astype(jnp.bfloat16)

    # 0/1 lane masks per horizontal tap: zero lanes whose contiguous flat read wrapped
    # into the neighbouring row (true column lies in the horizontal zero-padding).
    wcol = jnp.arange(Mi, dtype=jnp.int32) % Wo                       # output column per lane
    col = wcol[None, :] + (jnp.arange(k, dtype=jnp.int32)[:, None] - p)   # (k, Mi)
    masks = ((col >= 0) & (col < W)).astype(jnp.bfloat16)             # (k, Mi)

    vmem_limit = 32 * 1024 * 1024   # ample for these tiles; within every generation's budget

    # ---------------- phase A: implicit-GEMM conv + per-image sum / sum-of-squares --------------
    def conv_stats_kernel(w_ref, m_ref, x_ref, y_ref, psum_ref, psq_ref):
        # w_ref: (k*k, C2, C1) bf16 resident ; m_ref: (k, Mi) bf16 resident
        # x_ref: (C1, Lf) bf16 — one flattened padded image, resident for this grid step
        # y_ref: (C2, Mi) bf16 ; psum_ref / psq_ref: (C2, 1) f32 per-image partial stats
        acc = jnp.zeros((C2, Mi), jnp.float32)
        for kh in range(k):
            for kw in range(k):
                o = kh * W + kw
                patch = x_ref[:, o:o + Mi]                     # (C1, Mi) contiguous static slice
                if (kw < p) or (Wo - 1 + kw - p >= W):         # tap reaches horizontal padding
                    patch = patch * m_ref[kw:kw + 1, :]
                # NOTE: (C2,C1)x(C1,Mi) uses a sliver of the MXU — fine while HBM-bound;
                # tile/pad C2 toward 128 sublanes if channel counts grow.
                acc = acc + jnp.dot(w_ref[kh * k + kw], patch,
                                    preferred_element_type=jnp.float32)
        y_ref[...] = acc.astype(y_ref.dtype)                   # bf16 intermediate
        # batch stats accumulated from the f32 MXU result (unaffected by the bf16 store)
        psum_ref[...] = jnp.sum(acc, axis=1, keepdims=True)
        psq_ref[...] = jnp.sum(acc * acc, axis=1, keepdims=True)

    y_t, psum, psq = pl.pallas_call(
        conv_stats_kernel,
        out_shape=(
            jax.ShapeDtypeStruct((N, C2, Mi), jnp.bfloat16),
            jax.ShapeDtypeStruct((N, C2, 1), jnp.float32),
            jax.ShapeDtypeStruct((N, C2, 1), jnp.float32),
        ),
        grid=(N,),
        in_specs=[
            pl.BlockSpec((k * k, C2, C1), lambda n: (0, 0, 0)),
            pl.BlockSpec((k, Mi), lambda n: (0, 0)),
            pl.BlockSpec((None, C1, Lf), lambda n: (n, 0, 0)),
        ],
        out_specs=(
            pl.BlockSpec((None, C2, Mi), lambda n: (n, 0, 0)),
            pl.BlockSpec((None, C2, 1), lambda n: (n, 0, 0)),
            pl.BlockSpec((None, C2, 1), lambda n: (n, 0, 0)),
        ),
        compiler_params=pltpu.CompilerParams(
            dimension_semantics=("parallel",),       # per-image partial stats => megacore-safe
            vmem_limit_bytes=vmem_limit,
        ),
        cost_estimate=pl.CostEstimate(
            flops=2 * N * Mi * C1 * k * k * C2,
            transcendentals=0,
            bytes_accessed=(N * C1 * Lf * 2 + k * k * C2 * C1 * 2 + k * Mi * 2
                            + N * C2 * Mi * 2 + 2 * N * C2 * 4),
        ),
    )(w_taps, masks, x_flat)

    # ---- tiny per-channel BN math over GLOBAL batch stats (plain JAX) ----
    count = jnp.float32(N * Mi)
    mean = jnp.sum(psum, axis=0)[:, 0] / count
    # E[y^2]-mean^2 can cancel in f32; clamp >=0.
    # TODO(synk): Welford / centred second pass if BN precision matters beyond ~1e-3.
    var = jnp.maximum(jnp.sum(psq, axis=0)[:, 0] / count - mean * mean, 0.0)
    inv_std = jax.lax.rsqrt(var + eps)
    a = (gamma * inv_std).astype(jnp.float32).reshape(C2, 1)
    b = (beta - mean * gamma * inv_std).astype(jnp.float32).reshape(C2, 1)

    # ---------------- phase B: fused BN affine + LeakyReLU(0.1), lane-dense ----------------
    def bn_act_kernel(y_ref, a_ref, b_ref, o_ref):
        z = y_ref[...].astype(jnp.float32) * a_ref[...] + b_ref[...]
        o_ref[...] = jnp.where(z >= 0, z, 0.1 * z)

    out = pl.pallas_call(
        bn_act_kernel,
        out_shape=jax.ShapeDtypeStruct((N, C2, Mi), jnp.float32),
        grid=(N,),
        in_specs=[
            pl.BlockSpec((None, C2, Mi), lambda n: (n, 0, 0)),
            pl.BlockSpec((C2, 1), lambda n: (0, 0)),
            pl.BlockSpec((C2, 1), lambda n: (0, 0)),
        ],
        out_specs=pl.BlockSpec((None, C2, Mi), lambda n: (n, 0, 0)),
        compiler_params=pltpu.CompilerParams(
            dimension_semantics=("parallel",),
            vmem_limit_bytes=vmem_limit,
        ),
        cost_estimate=pl.CostEstimate(
            flops=4 * N * C2 * Mi,
            transcendentals=0,
            bytes_accessed=N * C2 * Mi * (2 + 4) + 2 * C2 * 4,
        ),
    )(y_t, a, b)

    # (N, C2, Ho*Wo) -> NCHW is a free reshape (no transpose round trip).
    return out.reshape(N, C2, Ho, Wo)


if __name__ == "__main__":
    # Synthetic Conv(c1=4, c2=8, k=3, s=1) — deterministic parameter init.
    c1, c2, k, s = 4, 8, 3, 1
    key = jax.random.PRNGKey(0)
    kx, kw_, kg, kb = jax.random.split(key, 4)

    x = jax.random.normal(kx, (2, c1, 16, 16), dtype=jnp.float32)
    weight = 0.1 * jax.random.normal(kw_, (c2, c1, k, k), dtype=jnp.float32)
    gamma = 1.0 + 0.1 * jax.random.normal(kg, (c2,), dtype=jnp.float32)
    beta = 0.1 * jax.random.normal(kb, (c2,), dtype=jnp.float32)

    fwd = jax.jit(functools.partial(conv_forward, k=k, s=s))
    out = jax.block_until_ready(fwd(x, weight, gamma, beta))
    assert out.shape == (2, c2, 16, 16)
    assert out.dtype == jnp.float32

    # Loose reference check (bf16 MXU operands / bf16 y intermediate => small drift).
    p_ = autopad(k)
    ref = jax.lax.conv_general_dilated(
        x, weight, (s, s), [(p_, p_), (p_, p_)],
        dimension_numbers=("NCHW", "OIHW", "NCHW"))
    m_ = ref.mean(axis=(0, 2, 3), keepdims=True)
    v_ = ((ref - m_) ** 2).mean(axis=(0, 2, 3), keepdims=True)
    ref = (ref - m_) * jax.lax.rsqrt(v_ + 1e-5) * gamma.reshape(1, -1, 1, 1) \
        + beta.reshape(1, -1, 1, 1)
    ref = jnp.where(ref >= 0, ref, 0.1 * ref)
    max_err = jnp.max(jnp.abs(out - ref))
    assert max_err < 5e-2, f"max abs error too large: {max_err}"

    print("KERNEL_OK")
</pallas_src>

<mosaic_0001>
module attributes {stable_mosaic.version = 11 : i64} {
  func.func @bn_act_kernel(%arg0: i32, %arg1: memref<1x8x256xbf16, #tpu.memory_space<vmem>>, %arg2: memref<8x1xf32, #tpu.memory_space<vmem>>, %arg3: memref<8x1xf32, #tpu.memory_space<vmem>>, %arg4: memref<1x8x256xf32, #tpu.memory_space<vmem>>) attributes {dimension_semantics = [#tpu.dimension_semantics<parallel>], iteration_bounds = array<i64: 2>, scalar_prefetch = 0 : i64, scratch_operands = 0 : i64, tpu.core_type = #tpu.core_type<tc>, window_params = [{transform_indices = @transform_0, window_bounds = array<i64: 1, 8, 256>}, {pipeline_mode = #tpu.pipeline_mode<synchronous>, transform_indices = @transform_1, window_bounds = array<i64: 8, 1>}, {pipeline_mode = #tpu.pipeline_mode<synchronous>, transform_indices = @transform_2, window_bounds = array<i64: 8, 1>}, {transform_indices = @transform_3, window_bounds = array<i64: 1, 8, 256>}]} {
    %c0 = arith.constant 0 : index
    %c0_0 = arith.constant 0 : index
    %c0_1 = arith.constant 0 : index
    %0 = vector.load %arg1[%c0, %c0_0, %c0_1] : memref<1x8x256xbf16, #tpu.memory_space<vmem>>, vector<1x8x256xbf16>
    %1 = vector.shape_cast %0 : vector<1x8x256xbf16> to vector<8x256xbf16>
    %2 = arith.extf %1 : vector<8x256xbf16> to vector<8x256xf32>
    %c0_2 = arith.constant 0 : index
    %c0_3 = arith.constant 0 : index
    %3 = vector.load %arg2[%c0_2, %c0_3] : memref<8x1xf32, #tpu.memory_space<vmem>>, vector<8x1xf32>
    %4 = vector.broadcast %3 : vector<8x1xf32> to vector<8x256xf32>
    %5 = arith.mulf %2, %4 : vector<8x256xf32>
    %c0_4 = arith.constant 0 : index
    %c0_5 = arith.constant 0 : index
    %6 = vector.load %arg3[%c0_4, %c0_5] : memref<8x1xf32, #tpu.memory_space<vmem>>, vector<8x1xf32>
    %7 = vector.broadcast %6 : vector<8x1xf32> to vector<8x256xf32>
    %8 = arith.addf %5, %7 : vector<8x256xf32>
    %cst = arith.constant 0.000000e+00 : f32
    %9 = vector.broadcast %cst : f32 to vector<8x256xf32>
    %10 = arith.cmpf oge, %8, %9 : vector<8x256xf32>
    %cst_6 = arith.constant 1.000000e-01 : f32
    %11 = vector.broadcast %cst_6 : f32 to vector<8x256xf32>
    %12 = arith.mulf %11, %8 : vector<8x256xf32>
    %13 = arith.select %10, %8, %12 : vector<8x256xi1>, vector<8x256xf32>
    %c0_7 = arith.constant 0 : index
    %c0_8 = arith.constant 0 : index
    %c0_9 = arith.constant 0 : index
    %14 = vector.load %arg4[%c0_7, %c0_8, %c0_9] : memref<1x8x256xf32, #tpu.memory_space<vmem>>, vector<1x8x256xf32>
    %15 = vector.shape_cast %14 : vector<1x8x256xf32> to vector<8x256xf32>
    %16 = vector.shape_cast %13 : vector<8x256xf32> to vector<1x8x256xf32>
    tpu.vector_store %arg4[%c0_7, %c0_8, %c0_9], %16 {strides = array<i32>} : memref<1x8x256xf32, #tpu.memory_space<vmem>>, vector<1x8x256xf32>,
    return
  }
  func.func @transform_0(%arg0: i32) -> (i32, i32, i32) {
    %c0_i32 = arith.constant 0 : i32
    %c0_i32_0 = arith.constant 0 : i32
    %c0_i32_1 = arith.constant 0 : i32
    return %arg0, %c0_i32, %c0_i32_0 : i32, i32, i32
  }
  func.func @transform_1(%arg0: i32) -> (i32, i32) {
    %c0_i32 = arith.constant 0 : i32
    %c0_i32_0 = arith.constant 0 : i32
    %c0_i32_1 = arith.constant 0 : i32
    return %c0_i32, %c0_i32_0 : i32, i32
  }
  func.func @transform_2(%arg0: i32) -> (i32, i32) {
    %c0_i32 = arith.constant 0 : i32
    %c0_i32_0 = arith.constant 0 : i32
    %c0_i32_1 = arith.constant 0 : i32
    return %c0_i32, %c0_i32_0 : i32, i32
  }
  func.func @transform_3(%arg0: i32) -> (i32, i32, i32) {
    %c0_i32 = arith.constant 0 : i32
    %c0_i32_0 = arith.constant 0 : i32
    %c0_i32_1 = arith.constant 0 : i32
    return %arg0, %c0_i32, %c0_i32_0 : i32, i32, i32
  }
}

module attributes {stable_mosaic.version = 11 : i64} {
  func.func @conv_stats_kernel(%arg0: i32, %arg1: memref<9x8x4xbf16, #tpu.memory_space<vmem>>, %arg2: memref<3x256xbf16, #tpu.memory_space<vmem>>, %arg3: memref<1x4x290xbf16, #tpu.memory_space<vmem>>, %arg4: memref<1x8x256xbf16, #tpu.memory_space<vmem>>, %arg5: memref<1x8x1xf32, #tpu.memory_space<vmem>>, %arg6: memref<1x8x1xf32, #tpu.memory_space<vmem>>) attributes {dimension_semantics = [#tpu.dimension_semantics<parallel>], iteration_bounds = array<i64: 2>, scalar_prefetch = 0 : i64, scratch_operands = 0 : i64, tpu.core_type = #tpu.core_type<tc>, window_params = [{pipeline_mode = #tpu.pipeline_mode<synchronous>, transform_indices = @transform_0, window_bounds = array<i64: 9, 8, 4>}, {pipeline_mode = #tpu.pipeline_mode<synchronous>, transform_indices = @transform_1, window_bounds = array<i64: 3, 256>}, {transform_indices = @transform_2, window_bounds = array<i64: 1, 4, 290>}, {transform_indices = @transform_3, window_bounds = array<i64: 1, 8, 256>}, {transform_indices = @transform_4, window_bounds = array<i64: 1, 8, 1>}, {transform_indices = @transform_5, window_bounds = array<i64: 1, 8, 1>}]} {
    %cst = arith.constant 0.000000e+00 : f32
    %0 = vector.broadcast %cst : f32 to vector<8x256xf32>
    %c0 = arith.constant 0 : index
    %c0_0 = arith.constant 0 : index
    %c0_1 = arith.constant 0 : index
    %1 = vector.load %arg3[%c0, %c0_0, %c0_1] : memref<1x4x290xbf16, #tpu.memory_space<vmem>>, vector<1x4x256xbf16>
    %2 = vector.shape_cast %1 : vector<1x4x256xbf16> to vector<4x256xbf16>
    %c0_2 = arith.constant 0 : index
    %c0_3 = arith.constant 0 : index
    %3 = vector.load %arg2[%c0_2, %c0_3] : memref<3x256xbf16, #tpu.memory_space<vmem>>, vector<1x256xbf16>
    %4 = vector.broadcast %3 : vector<1x256xbf16> to vector<4x256xbf16>
    %5 = arith.mulf %2, %4 : vector<4x256xbf16>
    %c0_4 = arith.constant 0 : index
    %c0_5 = arith.constant 0 : index
    %c0_6 = arith.constant 0 : index
    %6 = vector.load %arg1[%c0_4, %c0_5, %c0_6] : memref<9x8x4xbf16, #tpu.memory_space<vmem>>, vector<1x8x4xbf16>
    %7 = vector.shape_cast %6 : vector<1x8x4xbf16> to vector<8x4xbf16>
    %cst_7 = arith.constant dense<0.000000e+00> : vector<8x256xf32>
    %8 = tpu.matmul %7, %5, %cst_7 {dimension_numbers = #tpu.dot_dimension_numbers<[1], [0], [0], [1], [0, 0, 1, 1], [], []>} : vector<8x4xbf16>, vector<4x256xbf16>, vector<8x256xf32> -> vector<8x256xf32>
    %9 = arith.addf %0, %8 : vector<8x256xf32>
    %c0_8 = arith.constant 0 : index
    %c0_9 = arith.constant 0 : index
    %c1 = arith.constant 1 : index
    %10 = vector.load %arg3[%c0_8, %c0_9, %c1] : memref<1x4x290xbf16, #tpu.memory_space<vmem>>, vector<1x4x256xbf16>
    %11 = vector.shape_cast %10 : vector<1x4x256xbf16> to vector<4x256xbf16>
    %c1_10 = arith.constant 1 : index
    %c0_11 = arith.constant 0 : index
    %c0_12 = arith.constant 0 : index
    %12 = vector.load %arg1[%c1_10, %c0_11, %c0_12] : memref<9x8x4xbf16, #tpu.memory_space<vmem>>, vector<1x8x4xbf16>
    %13 = vector.shape_cast %12 : vector<1x8x4xbf16> to vector<8x4xbf16>
    %cst_13 = arith.constant dense<0.000000e+00> : vector<8x256xf32>
    %14 = tpu.matmul %13, %11, %cst_13 {dimension_numbers = #tpu.dot_dimension_numbers<[1], [0], [0], [1], [0, 0, 1, 1], [], []>} : vector<8x4xbf16>, vector<4x256xbf16>, vector<8x256xf32> -> vector<8x256xf32>
    %15 = arith.addf %9, %14 : vector<8x256xf32>
    %c0_14 = arith.constant 0 : index
    %c0_15 = arith.constant 0 : index
    %c2 = arith.constant 2 : index
    %16 = vector.load %arg3[%c0_14, %c0_15, %c2] : memref<1x4x290xbf16, #tpu.memory_space<vmem>>, vector<1x4x256xbf16>
    %17 = vector.shape_cast %16 : vector<1x4x256xbf16> to vector<4x256xbf16>
    %c2_16 = arith.constant 2 : index
    %c0_17 = arith.constant 0 : index
    %18 = vector.load %arg2[%c2_16, %c0_17] : memref<3x256xbf16, #tpu.memory_space<vmem>>, vector<1x256xbf16>
    %19 = vector.broadcast %18 : vector<1x256xbf16> to vector<4x256xbf16>
    %20 = arith.mulf %17, %19 : vector<4x256xbf16>
    %c2_18 = arith.constant 2 : index
    %c0_19 = arith.constant 0 : index
    %c0_20 = arith.constant 0 : index
    %21 = vector.load %arg1[%c2_18, %c0_19, %c0_20] : memref<9x8x4xbf16, #tpu.memory_space<vmem>>, vector<1x8x4xbf16>
    %22 = vector.shape_cast %21 : vector<1x8x4xbf16> to vector<8x4xbf16>
    %cst_21 = arith.constant dense<0.000000e+00> : vector<8x256xf32>
    %23 = tpu.matmul %22, %20, %cst_21 {dimension_numbers = #tpu.dot_dimension_numbers<[1], [0], [0], [1], [0, 0, 1, 1], [], []>} : vector<8x4xbf16>, vector<4x256xbf16>, vector<8x256xf32> -> vector<8x256xf32>
    %24 = arith.addf %15, %23 : vector<8x256xf32>
    %c0_22 = arith.constant 0 : index
    %c0_23 = arith.constant 0 : index
    %c16 = arith.constant 16 : index
    %25 = vector.load %arg3[%c0_22, %c0_23, %c16] : memref<1x4x290xbf16, #tpu.memory_space<vmem>>, vector<1x4x256xbf16>
    %26 = vector.shape_cast %25 : vector<1x4x256xbf16> to vector<4x256xbf16>
    %c0_24 = arith.constant 0 : index
    %c0_25 = arith.constant 0 : index
    %27 = vector.load %arg2[%c0_24, %c0_25] : memref<3x256xbf16, #tpu.memory_space<vmem>>, vector<1x256xbf16>
    %28 = vector.broadcast %27 : vector<1x256xbf16> to vector<4x256xbf16>
    %29 = arith.mulf %26, %28 : vector<4x256xbf16>
    %c3 = arith.constant 3 : index
    %c0_26 = arith.constant 0 : index
    %c0_27 = arith.constant 0 : index
    %30 = vector.load %arg1[%c3, %c0_26, %c0_27] : memref<9x8x4xbf16, #tpu.memory_space<vmem>>, vector<1x8x4xbf16>
    %31 = vector.shape_cast %30 : vector<1x8x4xbf16> to vector<8x4xbf16>
    %cst_28 = arith.constant dense<0.000000e+00> : vector<8x256xf32>
    %32 = tpu.matmul %31, %29, %cst_28 {dimension_numbers = #tpu.dot_dimension_numbers<[1], [0], [0], [1], [0, 0, 1, 1], [], []>} : vector<8x4xbf16>, vector<4x256xbf16>, vector<8x256xf32> -> vector<8x256xf32>
    %33 = arith.addf %24, %32 : vector<8x256xf32>
    %c0_29 = arith.constant 0 : index
    %c0_30 = arith.constant 0 : index
    %c17 = arith.constant 17 : index
    %34 = vector.load %arg3[%c0_29, %c0_30, %c17] : memref<1x4x290xbf16, #tpu.memory_space<vmem>>, vector<1x4x256xbf16>
    %35 = vector.shape_cast %34 : vector<1x4x256xbf16> to vector<4x256xbf16>
    %c4 = arith.constant 4 : index
    %c0_31 = arith.constant 0 : index
    %c0_32 = arith.constant 0 : index
    %36 = vector.load %arg1[%c4, %c0_31, %c0_32] : memref<9x8x4xbf16, #tpu.memory_space<vmem>>, vector<1x8x4xbf16>
    %37 = vector.shape_cast %36 : vector<1x8x4xbf16> to vector<8x4xbf16>
    %cst_33 = arith.constant dense<0.000000e+00> : vector<8x256xf32>
    %38 = tpu.matmul %37, %35, %cst_33 {dimension_numbers = #tpu.dot_dimension_numbers<[1], [0], [0], [1], [0, 0, 1, 1], [], []>} : vector<8x4xbf16>, vector<4x256xbf16>, vector<8x256xf32> -> vector<8x256xf32>
    %39 = arith.addf %33, %38 : vector<8x256xf32>
    %c0_34 = arith.constant 0 : index
    %c0_35 = arith.constant 0 : index
    %c18 = arith.constant 18 : index
    %40 = vector.load %arg3[%c0_34, %c0_35, %c18] : memref<1x4x290xbf16, #tpu.memory_space<vmem>>, vector<1x4x256xbf16>
    %41 = vector.shape_cast %40 : vector<1x4x256xbf16> to vector<4x256xbf16>
    %c2_36 = arith.constant 2 : index
    %c0_37 = arith.constant 0 : index
    %42 = vector.load %arg2[%c2_36, %c0_37] : memref<3x256xbf16, #tpu.memory_space<vmem>>, vector<1x256xbf16>
    %43 = vector.broadcast %42 : vector<1x256xbf16> to vector<4x256xbf16>
    %44 = arith.mulf %41, %43 : vector<4x256xbf16>
    %c5 = arith.constant 5 : index
    %c0_38 = arith.constant 0 : index
    %c0_39 = arith.constant 0 : index
    %45 = vector.load %arg1[%c5, %c0_38, %c0_39] : memref<9x8x4xbf16, #tpu.memory_space<vmem>>, vector<1x8x4xbf16>
    %46 = vector.shape_cast %45 : vector<1x8x4xbf16> to vector<8x4xbf16>
    %cst_40 = arith.constant dense<0.000000e+00> : vector<8x256xf32>
    %47 = tpu.matmul %46, %44, %cst_40 {dimension_numbers = #tpu.dot_dimension_numbers<[1], [0], [0], [1], [0, 0, 1, 1], [], []>} : vector<8x4xbf16>, vector<4x256xbf16>, vector<8x256xf32> -> vector<8x256xf32>
    %48 = arith.addf %39, %47 : vector<8x256xf32>
    %c0_41 = arith.constant 0 : index
    %c0_42 = arith.constant 0 : index
    %c32 = arith.constant 32 : index
    %49 = vector.load %arg3[%c0_41, %c0_42, %c32] : memref<1x4x290xbf16, #tpu.memory_space<vmem>>, vector<1x4x256xbf16>
    %50 = vector.shape_cast %49 : vector<1x4x256xbf16> to vector<4x256xbf16>
    %c0_43 = arith.constant 0 : index
    %c0_44 = arith.constant 0 : index
    %51 = vector.load %arg2[%c0_43, %c0_44] : memref<3x256xbf16, #tpu.memory_space<vmem>>, vector<1x256xbf16>
    %52 = vector.broadcast %51 : vector<1x256xbf16> to vector<4x256xbf16>
    %53 = arith.mulf %50, %52 : vector<4x256xbf16>
    %c6 = arith.constant 6 : index
    %c0_45 = arith.constant 0 : index
    %c0_46 = arith.constant 0 : index
    %54 = vector.load %arg1[%c6, %c0_45, %c0_46] : memref<9x8x4xbf16, #tpu.memory_space<vmem>>, vector<1x8x4xbf16>
    %55 = vector.shape_cast %54 : vector<1x8x4xbf16> to vector<8x4xbf16>
    %cst_47 = arith.constant dense<0.000000e+00> : vector<8x256xf32>
    %56 = tpu.matmul %55, %53, %cst_47 {dimension_numbers = #tpu.dot_dimension_numbers<[1], [0], [0], [1], [0, 0, 1, 1], [], []>} : vector<8x4xbf16>, vector<4x256xbf16>, vector<8x256xf32> -> vector<8x256xf32>
    %57 = arith.addf %48, %56 : vector<8x256xf32>
    %c0_48 = arith.constant 0 : index
    %c0_49 = arith.constant 0 : index
    %c33 = arith.constant 33 : index
    %58 = vector.load %arg3[%c0_48, %c0_49, %c33] : memref<1x4x290xbf16, #tpu.memory_space<vmem>>, vector<1x4x256xbf16>
    %59 = vector.shape_cast %58 : vector<1x4x256xbf16> to vector<4x256xbf16>
    %c7 = arith.constant 7 : index
    %c0_50 = arith.constant 0 : index
    %c0_51 = arith.constant 0 : index
    %60 = vector.load %arg1[%c7, %c0_50, %c0_51] : memref<9x8x4xbf16, #tpu.memory_space<vmem>>, vector<1x8x4xbf16>
    %61 = vector.shape_cast %60 : vector<1x8x4xbf16> to vector<8x4xbf16>
    %cst_52 = arith.constant dense<0.000000e+00> : vector<8x256xf32>
    %62 = tpu.matmul %61, %59, %cst_52 {dimension_numbers = #tpu.dot_dimension_numbers<[1], [0], [0], [1], [0, 0, 1, 1], [], []>} : vector<8x4xbf16>, vector<4x256xbf16>, vector<8x256xf32> -> vector<8x256xf32>
    %63 = arith.addf %57, %62 : vector<8x256xf32>
    %c0_53 = arith.constant 0 : index
    %c0_54 = arith.constant 0 : index
    %c34 = arith.constant 34 : index
    %64 = vector.load %arg3[%c0_53, %c0_54, %c34] : memref<1x4x290xbf16, #tpu.memory_space<vmem>>, vector<1x4x256xbf16>
    %65 = vector.shape_cast %64 : vector<1x4x256xbf16> to vector<4x256xbf16>
    %c2_55 = arith.constant 2 : index
    %c0_56 = arith.constant 0 : index
    %66 = vector.load %arg2[%c2_55, %c0_56] : memref<3x256xbf16, #tpu.memory_space<vmem>>, vector<1x256xbf16>
    %67 = vector.broadcast %66 : vector<1x256xbf16> to vector<4x256xbf16>
    %68 = arith.mulf %65, %67 : vector<4x256xbf16>
    %c8 = arith.constant 8 : index
    %c0_57 = arith.constant 0 : index
    %c0_58 = arith.constant 0 : index
    %69 = vector.load %arg1[%c8, %c0_57, %c0_58] : memref<9x8x4xbf16, #tpu.memory_space<vmem>>, vector<1x8x4xbf16>
    %70 = vector.shape_cast %69 : vector<1x8x4xbf16> to vector<8x4xbf16>
    %cst_59 = arith.constant dense<0.000000e+00> : vector<8x256xf32>
    %71 = tpu.matmul %70, %68, %cst_59 {dimension_numbers = #tpu.dot_dimension_numbers<[1], [0], [0], [1], [0, 0, 1, 1], [], []>} : vector<8x4xbf16>, vector<4x256xbf16>, vector<8x256xf32> -> vector<8x256xf32>
    %72 = arith.addf %63, %71 : vector<8x256xf32>
    %73 = arith.truncf %72 : vector<8x256xf32> to vector<8x256xbf16>
    %c0_60 = arith.constant 0 : index
    %c0_61 = arith.constant 0 : index
    %c0_62 = arith.constant 0 : index
    %74 = vector.load %arg4[%c0_60, %c0_61, %c0_62] : memref<1x8x256xbf16, #tpu.memory_space<vmem>>, vector<1x8x256xbf16>
    %75 = vector.shape_cast %74 : vector<1x8x256xbf16> to vector<8x256xbf16>
    %76 = vector.shape_cast %73 : vector<8x256xbf16> to vector<1x8x256xbf16>
    tpu.vector_store %arg4[%c0_60, %c0_61, %c0_62], %76 {strides = array<i32>} : memref<1x8x256xbf16, #tpu.memory_space<vmem>>, vector<1x8x256xbf16>,
    %cst_63 = arith.constant dense<0.000000e+00> : vector<8xf32>
    %77 = vector.multi_reduction <add>, %72, %cst_63 [1] : vector<8x256xf32> to vector<8xf32>
    %78 = vector.shape_cast %77 : vector<8xf32> to vector<8x1xf32>
    %c0_64 = arith.constant 0 : index
    %c0_65 = arith.constant 0 : index
    %c0_66 = arith.constant 0 : index
    %79 = vector.load %arg5[%c0_64, %c0_65, %c0_66] : memref<1x8x1xf32, #tpu.memory_space<vmem>>, vector<1x8x1xf32>
    %80 = vector.shape_cast %79 : vector<1x8x1xf32> to vector<8x1xf32>
    %81 = vector.shape_cast %78 : vector<8x1xf32> to vector<1x8x1xf32>
    tpu.vector_store %arg5[%c0_64, %c0_65, %c0_66], %81 {strides = array<i32>} : memref<1x8x1xf32, #tpu.memory_space<vmem>>, vector<1x8x1xf32>,
    %82 = arith.mulf %72, %72 : vector<8x256xf32>
    %cst_67 = arith.constant dense<0.000000e+00> : vector<8xf32>
    %83 = vector.multi_reduction <add>, %82, %cst_67 [1] : vector<8x256xf32> to vector<8xf32>
    %84 = vector.shape_cast %83 : vector<8xf32> to vector<8x1xf32>
    %c0_68 = arith.constant 0 : index
    %c0_69 = arith.constant 0 : index
    %c0_70 = arith.constant 0 : index
    %85 = vector.load %arg6[%c0_68, %c0_69, %c0_70] : memref<1x8x1xf32, #tpu.memory_space<vmem>>, vector<1x8x1xf32>
    %86 = vector.shape_cast %85 : vector<1x8x1xf32> to vector<8x1xf32>
    %87 = vector.shape_cast %84 : vector<8x1xf32> to vector<1x8x1xf32>
    tpu.vector_store %arg6[%c0_68, %c0_69, %c0_70], %87 {strides = array<i32>} : memref<1x8x1xf32, #tpu.memory_space<vmem>>, vector<1x8x1xf32>,
    return
  }
  func.func @transform_0(%arg0: i32) -> (i32, i32, i32) {
    %c0_i32 = arith.constant 0 : i32
    %c0_i32_0 = arith.constant 0 : i32
    %c0_i32_1 = arith.constant 0 : i32
    %c0_i32_2 = arith.constant 0 : i32
    return %c0_i32, %c0_i32_0, %c0_i32_1 : i32, i32, i32
  }
  func.func @transform_1(%arg0: i32) -> (i32, i32) {
    %c0_i32 = arith.constant 0 : i32
    %c0_i32_0 = arith.constant 0 : i32
    %c0_i32_1 = arith.constant 0 : i32
    return %c0_i32, %c0_i32_0 : i32, i32
  }
  func.func @transform_2(%arg0: i32) -> (i32, i32, i32) {
    %c0_i32 = arith.constant 0 : i32
    %c0_i32_0 = arith.constant 0 : i32
    %c0_i32_1 = arith.constant 0 : i32
    return %arg0, %c0_i32, %c0_i32_0 : i32, i32, i32
  }
  func.func @transform_3(%arg0: i32) -> (i32, i32, i32) {
    %c0_i32 = arith.constant 0 : i32
    %c0_i32_0 = arith.constant 0 : i32
    %c0_i32_1 = arith.constant 0 : i32
    return %arg0, %c0_i32, %c0_i32_0 : i32, i32, i32
  }
  func.func @transform_4(%arg0: i32) -> (i32, i32, i32) {
    %c0_i32 = arith.constant 0 : i32
    %c0_i32_0 = arith.constant 0 : i32
    %c0_i32_1 = arith.constant 0 : i32
    return %arg0, %c0_i32, %c0_i32_0 : i32, i32, i32
  }
  func.func @transform_5(%arg0: i32) -> (i32, i32, i32) {
    %c0_i32 = arith.constant 0 : i32
    %c0_i32_0 = arith.constant 0 : i32
    %c0_i32_1 = arith.constant 0 : i32
    return %arg0, %c0_i32, %c0_i32_0 : i32, i32, i32
  }
}

</mosaic_0001>

<bundles_post_ra>
// kernel: conv_forward.3
= control target key start
LH: loop header
LB: loop body
LE: loop exit
PB: predicated region body
PF: predicated region fallthrough
CT: control target
= control target key end

     0   :  { %s305_s12 = smov 0   ;;  %s328_s0 = inlined_call_operand.vmem [shape: bf16[2,8,256], index: 0, kind: input, shape index: {}]   ;;  %s329_s1 = inlined_call_operand.vmem [shape: f32[8,1], index: 1, kind: input, shape index: {}]   ;;  %s330_s2 = inlined_call_operand.vmem [shape: f32[8,1], index: 2, kind: input, shape index: {}]   ;;  %s331_s3 = inlined_call_operand.vmem [shape: f32[2,8,256], index: 3, kind: output, shape index: {}]  }
   0x1 LB: > { %s253_s13 = sadd.s32 4294967295, %s282_s12   ;;  %p257_p0 = scmp.ge.s32.totalorder %s282_s12, 1  ;;  %s282_s12 = sphi %s305_s12, %s13_s12  }
   0x2   : > { %p137_p1 = scmp.lt.s32.totalorder %s282_s12, 3 }
   0x4   : > { %p138_p2 = pnand %p257_p0, %p137_p1 }
   0x5   : > { %v174_v0 = vld [vmem:[%s329_s1] sm:$0xff] (!%p138_p2)  ;;  %v284_v1 = vmov (!%p138_p2), 0   ;;  %p161_p3 = scmp.lt.s32.totalorder (!%p138_p2), %s253_s13, 1 }
   0x6   : > { %141 = sbr.rel (%p138_p2) target bundleno = 145 (0x91), region = 32  ;;  %275 = vset.pattern.permute.xlu0 (!%p138_p2), %v284_v1  ;;  %v182_v2 = vld [vmem:[%s330_s2] sm:$0xff] (!%p138_p2) }
   0x7   : > { %177 = vperm.xlu0 (!%p138_p2), %275, %v174_v0  }
   0xb   : > { %185 = vperm.xlu0 (!%p138_p2), %275, %v182_v2  }
   0xd   : > { %s333_s13 = smov (!%p161_p3, %s253_s13), 1 }
   0xe   : > { %s264_s18 = sshll.u32 %s333_s13, 3  ;;  %s265_s22 = sshll.u32 %s333_s13, 4 }
   0xf   : > { %s165_s21 = scalar_lea.vmem %s328_s0, %s264_s18  ;;  %s170_s25 = scalar_lea.vmem %s331_s3, %s265_s22 }
  0x10   : > { %v171_v3 = vld [vmem:[%s165_s21] sm:$0xff] }
  0x11   : > { %v172_v4 = vunpack.c.l.bf16 %v171_v3  ;;  %v173_v5 = vunpack.c.h.bf16 %v171_v3 }
  0x86   : > { %v178_v6 = vpop.permute.xlu0 %177 }
  0x87   : > { %v180_v7 = vmul.f32 %v178_v6, %v172_v4  ;;  %v181_v8 = vmul.f32 %v178_v6, %v173_v5 }
  0x8a   : > { %v186_v9 = vpop.permute.xlu0 %185 }
  0x8b   : > { %v188_v10 = vadd.f32 %v186_v9, %v180_v7  ;;  %v189_v11 = vadd.f32 %v186_v9, %v181_v8 }
  0x8d   : > { %vm190_vm0 = vcmp.ge.f32.partialorder %v188_v10, 0.0  ;;  %vm191_vm1 = vcmp.ge.f32.partialorder %v189_v11, 0.0  ;;  %v192_v12 = vmul.f32 0.1, %v188_v10  ;;  %v193_v13 = vmul.f32 0.1, %v189_v11 }
  0x8f   : > { %v194_v14 = vsel %vm190_vm0, %v188_v10, %v192_v12  ;;  %v195_v15 = vsel %vm191_vm1, %v189_v11, %v193_v13 }
  0x90   : > { %196 = vst [vmem:[%s170_s25] sm:$0xff] %v194_v14  ;;  %197 = vst [vmem:[%s170_s25 + $0x8] sm:$0xff] %v195_v15 }
  0x91 PF: > { %s13_s12 = sadd.s32 1, %s282_s12  }
  0x92   : > { %p10_p4 = scmp.ge.s32.totalorder %s13_s12, 4  }
  0x94   :  { %12 = sbr.rel (!%p10_p4) target bundleno = 1 (0x1), region = 62 }

// kernel: conv_forward.2
= control target key start
LH: loop header
LB: loop body
LE: loop exit
PB: predicated region body
PF: predicated region fallthrough
CT: control target
= control target key end

     0   :  { %s1351_s18 = smov 0   ;;  %s1499_s0 = inlined_call_operand.vmem [shape: bf16[9,8,4], index: 0, kind: input, shape index: {}]   ;;  %s1500_s1 = inlined_call_operand.vmem [shape: bf16[3,256], index: 1, kind: input, shape index: {}]   ;;  %s1501_s2 = inlined_call_operand.vmem [shape: bf16[2,4,290], index: 2, kind: input, shape index: {}]   ;;  %s1502_s3 = inlined_call_operand.vmem [shape: bf16[2,8,256], index: 3, kind: output, shape index: {0}]   ;;  %s1503_s4 = inlined_call_operand.vmem [shape: f32[2,8,1], index: 4, kind: output, shape index: {1}]   ;;  %s1504_s5 = inlined_call_operand.vmem [shape: f32[2,8,1], index: 5, kind: output, shape index: {2}]  }
   0x1 LB: > { %s1198_s19 = sadd.s32 4294967295, %s1304_s18   ;;  %p1202_p0 = scmp.ge.s32.totalorder %s1304_s18, 1  ;;  %s1304_s18 = sphi %s1351_s18, %s16_s18  }
   0x2   : > { %p192_p1 = scmp.lt.s32.totalorder %s1304_s18, 3 }
   0x4   : > { %p193_p2 = pnand %p1202_p0, %p192_p1 }
   0x5   : > { %v261_v0 = vlaneseq (!%p193_p2)  ;;  %v1214_v1 = vld.sshfl [vmem:[%s1500_s1] sm:$0x22 pattern:$0x76325410] (!%p193_p2)  ;;  %v1306_v2 = vmov (!%p193_p2), 1983009808  }
   0x6   : > { %196 = sbr.rel (%p193_p2) target bundleno = 661 (0x295), region = 32  ;;  %v276_v3 = vunpack.c.l.s4 (!%p193_p2), %v1306_v2  ;;  %v435_v4 = vcombine.high (!%p193_p2), %v1214_v1, %v1214_v1  ;;  %v1208_v5 = vld.sshfl [vmem:[%s1500_s1] sm:$0x11 pattern:$0x76325410] (!%p193_p2)  ;;  %v437_v7 = vpack.i.b16 (!%p193_p2), %v1214_v1, %v1214_v1  ;;  %p228_p3 = scmp.lt.s32.totalorder (!%p193_p2), %s1198_s19, 1 }
   0x7   : > { %v262_v6 = vshrl.u32 (!%p193_p2), %v261_v0, 7  ;;  %v257_v8 = vcombine.high (!%p193_p2), %v1208_v5, %v1208_v5  ;;  %v259_v9 = vpack.i.b16 (!%p193_p2), %v1208_v5, %v1208_v5  ;;  %s1307_s28 = smov (!%p193_p2), 18   ;;  %s1308_s29 = smov (!%p193_p2), 2   ;;  %v1314_v36 = vmov (!%p193_p2), 0  }
   0x8   : > { %v277_v10 = vunpack.c.0.s8 (!%p193_p2), %v276_v3  ;;  %v444_v11 = vpack.i.b16 (!%p193_p2), %v435_v4, %v435_v4  ;;  %s1309_s30 = smov (!%p193_p2), 32   ;;  %s1310_s6 = smov (!%p193_p2), 16   ;;  %705 = vmatprep.mubr.bf16.mxu0 (!%p193_p2), %v1314_v36  ;;  %357 = vmatprep.mubr.bf16.mxu1 (!%p193_p2), %v1314_v36  ;;  %vm720_vm0 = vcmask (!%p193_p2), 146432   ;;  %vm808_vm1 = vcmask (!%p193_p2), 261120  }
   0x9   : > { %v441_v12 = vsub.s32 (!%p193_p2), 1, %v262_v6  ;;  %v263_v13 = vsub.s32 (!%p193_p2), 0, %v262_v6  ;;  %v266_v14 = vpack.i.b16 (!%p193_p2), %v257_v8, %v257_v8  ;;  %s1311_s7 = smov (!%p193_p2), 34   ;;  %s1312_s8 = smov (!%p193_p2), 111   ;;  %vm463_vm2 = vcmask (!%p193_p2), 15360  }
   0xa   : > { %v1367_v15 = vsub.s32 (!%p193_p2), %v277_v10, %v262_v6  ;;  %s1313_s9 = smov (!%p193_p2), 127   ;;  %s1315_s10 = smov (!%p193_p2), 110   ;;  %vm661_vm3 = vcmask (!%p193_p2), 908288   ;;  %vm318_vm4 = vcmask (!%p193_p2), 1041408   ;;  %vm311_vm5 = vcmask (!%p193_p2), 1039360  }
   0xb   : > { %v442_v16 = vrot.slane (!%p193_p2), %v437_v7, %v441_v12  ;;  %v449_v17 = vrot.slane (!%p193_p2), %v444_v11, %v441_v12  ;;  %v264_v18 = vrot.slane (!%p193_p2), %v259_v9, %v263_v13  ;;  %v271_v19 = vrot.slane (!%p193_p2), %v266_v14, %v263_v13  ;;  %s1316_s11 = smov (!%p193_p2), 96   ;;  %v1221_v6 = vld [vmem:[%s1499_s0 + $0x10] sm:$0xf] (!%p193_p2)  ;;  %s1317_s14 = smov (!%p193_p2), 126  }
   0xc   : > { %vm314_vm6 = vcmask (!%p193_p2), 31744   ;;  %vm551_vm7 = vcmask (!%p193_p2), 130048   ;;  %vm977_vm8 = vcmask (!%p193_p2), 277504   ;;  %s1318_s15 = smov (!%p193_p2), 95   ;;  %s1319_s20 = smov (!%p193_p2), 112   ;;  %vm749_vm9 = vcmask (!%p193_p2), 900096  }
   0xd   : > { %s1506_s19 = smov (!%p228_p3, %s1198_s19), 1  ;;  %v452_v20 = vcombine.low %v442_v16, %v449_v17  ;;  %v274_v21 = vcombine.low %v264_v18, %v271_v19  ;;  %s1320_s21 = smov 94   ;;  %vm837_vm10 = vcmask 785408   ;;  %vm918_vm11 = vcmask 777216  }
   0xe   : > { %s1271_s24 = smul.u32 6, %s1506_s19  ;;  %vm492_vm12 = vcmask 1031168   ;;  %vm580_vm13 = vcmask 916480   ;;  %vm1006_vm14 = vcmask 769024   ;;  %vm1073_vm15 = vcmask 7168  }
   0xf   : > { %v459_v23 = vrot.slane %v452_v20, %v1367_v15  ;;  %v1380_v24 = vrot.slane %v274_v21, %v1367_v15 }
  0x10   : > { %s1373_s27 = scalar_lea.vmem %s1501_s2, %s1271_s24 }
  0x11   : > { %v1376_v22 = vld [vmem:[%s1373_s27] sm:$0xf]  ;;  %717 = vrot.lane.b32.xlu0 %v459_v23, %s1307_s28  ;;  %460 = vrot.lane.b32.xlu1 %v459_v23, %s1308_s29 }
  0x12   : > { %v283_v25 = vmul.bf16 %v1380_v24, %v1376_v22  ;;  %v635_v26 = vld [vmem:[%s1373_s27] sm:$0x3f] }
  0x13   : > { %v646_v27 = vrot.slane %v635_v26, %v1367_v15  ;;  %v639_v28 = vcombine.high %v635_v26, %v635_v26  ;;  %v285_v29 = vld [vmem:[%s1373_s27] sm:$0x3f] }
  0x14   : > { %v296_v32 = vrot.slane %v285_v29, %v1367_v15  ;;  %v289_v34 = vcombine.high %v285_v29, %v285_v29  ;;  %v716_v39 = vld [vmem:[%s1373_s27] sm:$0x3f]  ;;  %v373_v10 = vrot.slane %v283_v25, %v1367_v15 }
  0x15   : > { %805 = vrot.lane.b32.xlu0 %v1380_v24, %s1309_s30  ;;  %548 = vrot.lane.b32.xlu1 %v1380_v24, %s1310_s6  ;;  %v654_v30 = vcombine.high %v646_v27, %v646_v27  ;;  %v653_v31 = vrot.slane %v639_v28, %v1367_v15  ;;  %v804_v45 = vld [vmem:[%s1373_s27] sm:$0x3f] }
  0x16   : > { %v304_v33 = vcombine.high %v296_v32, %v296_v32  ;;  %v303_v35 = vrot.slane %v289_v34, %v1367_v15  ;;  %v425_v55 = vld [vmem:[%s1373_s27] sm:$0x3f]  ;;  %v374_v20 = vcombine.high %v373_v10, %v373_v10 }
  0x17   : > { %v892_v62 = vld [vmem:[%s1373_s27] sm:$0x3f] }
  0x18   : > { %v903_v5 = vrot.slane %v892_v62, %v1367_v15  ;;  %v896_v13 = vcombine.high %v892_v62, %v892_v62  ;;  %v547_v21 = vld [vmem:[%s1373_s27] sm:$0x3f] }
  0x19   : > { %974 = vrot.lane.b32.xlu0 %v459_v23, %s1311_s7  ;;  %655 = vrot.lane.b32.xlu1 %v646_v27, %s1312_s8  ;;  %v973_v25 = vld [vmem:[%s1373_s27] sm:$0x3f] }
  0x1a   : > { %v911_v14 = vcombine.high %v903_v5, %v903_v5  ;;  %v910_v24 = vrot.slane %v896_v13, %v1367_v15  ;;  %v1209_v27 = vld [vmem:[%s1499_s0 + $0x4] sm:$0xf] }
  0x1d   : > { %657 = vrot.lane.b32.xlu0 %v654_v30, %s1312_s8  ;;  %659 = vrot.lane.b32.xlu1 %v653_v31, %s1312_s8  ;;  %v379_v30 = vsel %vm318_vm4, %v373_v10, 0 }
  0x21   : > { %305 = vrot.lane.b32.xlu0 %v296_v32, %s1313_s9  ;;  %307 = vrot.lane.b32.xlu1 %v304_v33, %s1313_s9 }
  0x25   : > { %309 = vrot.lane.b32.xlu0 %v303_v35, %s1313_s9 }
  0x83   : > { %v718_v37 = vpop.permute.xlu0 %717  ;;  %v461_v38 = vpop.permute.xlu1 %460 }
  0x84   : > { %v719_v40 = vrot.slane %v718_v37, 6  ;;  %v462_v47 = vrot.slane %v461_v38, 6 }
  0x86   : > { %v721_v41 = vsel %vm720_vm0, %v719_v40, %v718_v37  ;;  %v464_v56 = vsel %vm463_vm2, %v462_v47, %v461_v38 }
  0x87   : > { %v723_v42 = vmul.bf16 %v721_v41, %v716_v39  ;;  %v806_v43 = vpop.permute.xlu0 %805  ;;  %v1395_v44 = vpop.permute.xlu1 %548  ;;  %v466_v60 = vmul.bf16 %v464_v56, %v425_v55  ;;  %v284_v39 = vld [vmem:[%s1499_s0] sm:$0xf] }
  0x88   : > { %v807_v46 = vrot.slane %v806_v43, 6  ;;  %v550_v11 = vrot.slane %v1395_v44, 6 }
  0x89   : > { %v727_v48 = vcombine.high %v723_v42, %v723_v42  ;;  %v734_v49 = vrot.slane %v723_v42, %v1367_v15  ;;  %v477_v7 = vrot.slane %v466_v60, %v1367_v15  ;;  %v470_v17 = vcombine.high %v466_v60, %v466_v60 }
  0x8a   : > { %v809_v50 = vsel %vm808_vm1, %v807_v46, %v806_v43  ;;  %v552_v22 = vsel %vm551_vm7, %v550_v11, %v1395_v44  ;;  %v1230_v11 = vld [vmem:[%s1499_s0 + $0x1c] sm:$0xf] }
  0x8b   : > { %v811_v51 = vmul.bf16 %v809_v50, %v804_v45  ;;  %743 = vrot.lane.b32.xlu1 %v734_v49, %s1315_s10  ;;  %v742_v52 = vcombine.high %v734_v49, %v734_v49  ;;  %v975_v53 = vpop.permute.xlu0 %974  ;;  %v656_v54 = vpop.permute.xlu1 %655  ;;  %v741_v58 = vrot.slane %v727_v48, %v1367_v15  ;;  %v554_v28 = vmul.bf16 %v552_v22, %v547_v21  ;;  %v1224_v50 = vld [vmem:[%s1499_s0 + $0x14] sm:$0xf] }
  0x8c   : > { %v976_v16 = vrot.slane %v975_v53, 6  ;;  %v484_v29 = vrot.slane %v470_v17, %v1367_v15  ;;  %v485_v33 = vcombine.high %v477_v7, %v477_v7 }
  0x8d   : > { %v815_v57 = vcombine.high %v811_v51, %v811_v51  ;;  %745 = vrot.lane.b32.xlu0 %v742_v52, %s1315_s10  ;;  %v822_v59 = vrot.slane %v811_v51, %v1367_v15  ;;  %v558_v32 = vcombine.high %v554_v28, %v554_v28  ;;  %v565_v34 = vrot.slane %v554_v28, %v1367_v15 }
  0x8e   : > { %v978_v26 = vsel %vm977_vm8, %v976_v16, %v975_v53 }
  0x8f   : > { %747 = vrot.lane.b32.xlu1 %v741_v58, %s1315_s10  ;;  %v830_v61 = vcombine.high %v822_v59, %v822_v59  ;;  %v658_v63 = vpop.permute.xlu0 %657  ;;  %v660_v0 = vpop.permute.xlu1 %659  ;;  %v829_v3 = vrot.slane %v815_v57, %v1367_v15  ;;  %v980_v31 = vmul.bf16 %v978_v26, %v973_v25  ;;  %v572_v37 = vrot.slane %v558_v32, %v1367_v15 }
  0x90   : > { %v663_v1 = vsel %vm661_vm3, %v658_v63, %v660_v0  ;;  %v662_v2 = vsel %vm661_vm3, %v656_v54, %v658_v63  ;;  %v573_v38 = vcombine.high %v565_v34, %v565_v34 }
  0x91   : > { %831 = vrot.lane.b32.xlu0 %v822_v59, %s1316_s11  ;;  %1222 = vmatprep.subr.msk.bf16.mxu0 %vm318_vm4, %v663_v1  ;;  %v668_v4 = vsel %vm318_vm4, %v662_v2, 0  ;;  %v991_v35 = vrot.slane %v980_v31, %v1367_v15  ;;  %v984_v40 = vcombine.high %v980_v31, %v980_v31 }
  0x92   : > { %674 = vmatpush1.bf16.msra.mxu0 %v668_v4 }
  0x93   : > { %833 = vrot.lane.b32.xlu1 %v830_v61, %s1316_s11  ;;  %v306_v8 = vpop.permute.xlu0 %305  ;;  %v308_v9 = vpop.permute.xlu1 %307  ;;  %v999_v41 = vcombine.high %v991_v35, %v991_v35  ;;  %v998_v42 = vrot.slane %v984_v40, %v1367_v15  ;;  %v1227_v61 = vld [vmem:[%s1499_s0 + $0x18] sm:$0xf] }
  0x94   : > { %v312_v12 = vsel %vm311_vm5, %v306_v8, %v308_v9 }
  0x95   : > { %835 = vrot.lane.b32.xlu0 %v829_v3, %s1316_s11  ;;  %1223 = vmatmul.mubr.msk.bf16.vlgmr.msra.gmra.mrb[0].mxu0 %vm314_vm6, %v1221_v6  ;;  %v320_v19 = vsel %vm318_vm4, %v312_v12, 0  ;;  %s1239_s11 = sshll.u32 %s1506_s19, 3 }
  0x96   : > { %793 = vmatprep.mubr.bf16.mxu0 %v1314_v36  ;;  %s241_s19 = scalar_lea.vmem %s1503_s4, %s1239_s11 }
  0x97   : > { %486 = vrot.lane.b32.xlu1 %v477_v7, %s1317_s14  ;;  %v310_v18 = vpop.permute.xlu0 %309 }
  0x98   : > { %v313_v23 = vsel %vm311_vm5, %v308_v9, %v310_v18 }
  0x99   : > { %912 = vrot.lane.b32.xlu0 %v903_v5, %s1318_s15  ;;  %1210 = vmatprep.subr.msk.bf16.mxu1 %vm318_vm4, %v313_v23  ;;  %v1215_v5 = vld [vmem:[%s1499_s0 + $0x8] sm:$0xf] }
  0x9a   : > { %326 = vmatpush1.bf16.msra.mxu1 %v320_v19  ;;  %v1218_v19 = vld [vmem:[%s1499_s0 + $0xc] sm:$0xf] }
  0x9b   : > { %914 = vrot.lane.b32.xlu1 %v911_v14, %s1318_s15  ;;  %1212 = vmatprep.subr.msk.bf16.mxu1 %vm318_vm4, %v374_v20  ;;  %v1233_v20 = vld [vmem:[%s1499_s0 + $0x20] sm:$0xf] }
  0x9d   : > { %916 = vrot.lane.b32.xlu0 %v910_v24, %s1318_s15  ;;  %1211 = vmatmul.mubr.msk.bf16.vlgmr.msra.gmra.mrb[0].mxu1 %vm314_vm6, %v1209_v27 }
  0x9e   : > { %385 = vmatpush1.bf16.msra.mxu1 %v379_v30  ;;  %416 = vmatprep.mubr.bf16.mxu1 %v1314_v36 }
  0x9f   : > { %490 = vrot.lane.b32.xlu1 %v484_v29, %s1317_s14 }
  0xa1   : > { %488 = vrot.lane.b32.xlu0 %v485_v33, %s1317_s14  ;;  %s237_s14 = scalar_lea.vmem %s1502_s3, %s1239_s11 }
  0xa3   : > { %574 = vrot.lane.b32.xlu1 %v565_v34, %s1319_s20 }
  0xa5   : > { %1000 = vrot.lane.b32.xlu0 %v991_v35, %s1320_s21 }
  0xa7   : > { %578 = vrot.lane.b32.xlu1 %v572_v37, %s1319_s20 }
  0xa9   : > { %576 = vrot.lane.b32.xlu0 %v573_v38, %s1319_s20  ;;  %1213 = vmatmul.mubr.msk.bf16.vlgmr.msra.gmra.mrb[0].mxu1 %vm314_vm6, %v284_v39 }
  0xaa   : > { %536 = vmatprep.mubr.bf16.mxu1 %v1314_v36 }
  0xab   : > { %1002 = vrot.lane.b32.xlu1 %v999_v41, %s1320_s21 }
  0xad   : > { %1004 = vrot.lane.b32.xlu0 %v998_v42, %s1320_s21  ;;  %s245_s21 = scalar_lea.vmem %s1504_s5, %s1239_s11 }
  0xfd   : > { %v744_v43 = vpop.permute.xlu1 %743 }
  0xff   : > { %v746_v44 = vpop.permute.xlu0 %745 }
 0x100   : > { %v750_v45 = vsel %vm749_vm9, %v744_v43, %v746_v44 }
 0x101   : > { %v748_v46 = vpop.permute.xlu1 %747  ;;  %v756_v48 = vsel %vm318_vm4, %v750_v45, 0 }
 0x102   : > { %v751_v47 = vsel %vm749_vm9, %v746_v44, %v748_v46 }
 0x103   : > { %1225 = vmatprep.subr.msk.bf16.mxu0 %vm318_vm4, %v751_v47  ;;  %v832_v49 = vpop.permute.xlu0 %831 }
 0x104   : > { %762 = vmatpush1.bf16.msra.mxu0 %v756_v48 }
 0x105   : > { %v834_v51 = vpop.permute.xlu1 %833 }
 0x106   : > { %v838_v15 = vsel %vm837_vm10, %v832_v49, %v834_v51 }
 0x107   : > { %v844_v52 = vsel %vm318_vm4, %v838_v15, 0  ;;  %1226 = vmatmul.mubr.msk.bf16.vlgmr.msra.gmra.mrb[0].mxu0 %vm314_vm6, %v1224_v50  ;;  %v836_v53 = vpop.permute.xlu0 %835 }
 0x108   : > { %v839_v54 = vsel %vm837_vm10, %v834_v51, %v836_v53  ;;  %881 = vmatprep.mubr.bf16.mxu0 %v1314_v36 }
 0x109   : > { %v487_v55 = vpop.permute.xlu1 %486  ;;  %1228 = vmatprep.subr.msk.bf16.mxu0 %vm318_vm4, %v839_v54 }
 0x10a   : > { %850 = vmatpush1.bf16.msra.mxu0 %v844_v52 }
 0x10b   : > { %v913_v56 = vpop.permute.xlu0 %912 }
 0x10d   : > { %v915_v57 = vpop.permute.xlu1 %914 }
 0x10e   : > { %v919_v58 = vsel %vm918_vm11, %v913_v56, %v915_v57 }
 0x10f   : > { %v917_v59 = vpop.permute.xlu0 %916  ;;  %v925_v62 = vsel %vm318_vm4, %v919_v58, 0 }
 0x110   : > { %v920_v60 = vsel %vm918_vm11, %v915_v57, %v917_v59 }
 0x111   : > { %v491_v63 = vpop.permute.xlu1 %490  ;;  %1231 = vmatprep.subr.msk.bf16.mxu0 %vm318_vm4, %v920_v60 }
 0x113   : > { %1229 = vmatmul.mubr.msk.bf16.vlgmr.msra.gmra.mrb[0].mxu0 %vm314_vm6, %v1227_v61  ;;  %v489_v0 = vpop.permute.xlu0 %488 }
 0x114   : > { %v493_v1 = vsel %vm492_vm12, %v487_v55, %v489_v0  ;;  %v494_v2 = vsel %vm492_vm12, %v489_v0, %v491_v63  ;;  %931 = vmatpush1.bf16.msra.mxu0 %v925_v62  ;;  %962 = vmatprep.mubr.bf16.mxu0 %v1314_v36 }
 0x115   : > { %v499_v3 = vsel %vm318_vm4, %v493_v1, 0  ;;  %v575_v4 = vpop.permute.xlu1 %574  ;;  %1216 = vmatprep.subr.msk.bf16.mxu1 %vm318_vm4, %v494_v2 }
 0x116   : > { %505 = vmatpush1.bf16.msra.mxu1 %v499_v3 }
 0x117   : > { %v1001_v6 = vpop.permute.xlu0 %1000 }
 0x119   : > { %v579_v7 = vpop.permute.xlu1 %578  ;;  %1217 = vmatmul.mubr.msk.bf16.vlgmr.msra.gmra.mrb[0].mxu1 %vm314_vm6, %v1215_v5 }
 0x11a   : > { %624 = vmatprep.mubr.bf16.mxu1 %v1314_v36 }
 0x11b   : > { %v577_v8 = vpop.permute.xlu0 %576 }
 0x11c   : > { %v581_v9 = vsel %vm580_vm13, %v575_v4, %v577_v8  ;;  %v582_v10 = vsel %vm580_vm13, %v577_v8, %v579_v7 }
 0x11d   : > { %v587_v12 = vsel %vm318_vm4, %v581_v9, 0  ;;  %v1003_v13 = vpop.permute.xlu1 %1002  ;;  %1219 = vmatprep.subr.msk.bf16.mxu1 %vm318_vm4, %v582_v10 }
 0x11e   : > { %v1007_v14 = vsel %vm1006_vm14, %v1001_v6, %v1003_v13  ;;  %593 = vmatpush1.bf16.msra.mxu1 %v587_v12 }
 0x11f   : > { %1232 = vmatmul.mubr.msk.bf16.vlgmr.msra.gmra.mrb[0].mxu0 %vm314_vm6, %v1230_v11  ;;  %v1005_v16 = vpop.permute.xlu0 %1004  ;;  %v1013_v18 = vsel %vm318_vm4, %v1007_v14, 0 }
 0x120   : > { %v1008_v17 = vsel %vm1006_vm14, %v1003_v13, %v1005_v16  ;;  %1050 = vmatprep.mubr.bf16.mxu0 %v1314_v36 }
 0x121   : > { %1234 = vmatprep.subr.msk.bf16.mxu0 %vm318_vm4, %v1008_v17 }
 0x122   : > { %1019 = vmatpush1.bf16.msra.mxu0 %v1013_v18 }
 0x125   : > { %1220 = vmatmul.mubr.msk.bf16.vlgmr.msra.gmra.mrb[0].mxu1 %vm314_vm6, %v1218_v19 }
 0x12b   : > { %1235 = vmatmul.mubr.msk.bf16.vlgmr.msra.gmra.mrb[0].mxu0 %vm314_vm6, %v1233_v20 }
 0x1f8   : > { %v626_v21 = vpop.f32.mrb[0].mxu1 }
 0x1f9   : > { %v628_v22 = vpop.f32.mrb[1].mxu1 }
 0x1fa   : > { %v630_v36 = vpop.f32.mrb[2].mxu1 }
 0x1fb   : > { %v631_v23 = vpop.f32.mrb[3].mxu1 }
 0x1fe   : > { %v1052_v24 = vpop.f32.mrb[0].mxu0 }
 0x1ff   : > { %v1241_v25 = vadd.f32 %v1052_v24, %v626_v21  ;;  %v1054_v26 = vpop.f32.mrb[1].mxu0 }
 0x200   : > { %v1242_v27 = vadd.f32 %v1054_v26, %v628_v22  ;;  %v1056_v28 = vpop.f32.mrb[2].mxu0 }
 0x201   : > { %v1057_v29 = vpop.f32.mrb[3].mxu0  ;;  %v1075_v30 = vmul.f32 %v1241_v25, %v1241_v25 }
 0x202   : > { %v1240_v31 = vpack.c.bf16 %v1242_v27, %v1241_v25  ;;  %v1070_v32 = vadd.f32 %v1242_v27, %v1241_v25  ;;  %v1076_v33 = vmul.f32 %v1242_v27, %v1242_v27 }
 0x204   : > { %1071 = vadd.xlane.f32.xlu1 %v1070_v32  ;;  %v1077_v34 = vadd.f32 %v1076_v33, %v1075_v30  ;;  %1069 = vst [vmem:[%s237_s14] sm:$0xff] %v1240_v31 }
 0x206   : > { %1078 = vadd.xlane.f32.xlu0 %v1077_v34 }
 0x291   : > { %v1072_v35 = vpop.xlane.xlu1 %1071 }
 0x292   : > { %1074 = vst.msk [vmem:[%s241_s19] sm:$0xff] %vm1073_vm15, %v1072_v35 }
 0x293   : > { %v1079_v37 = vpop.xlane.xlu0 %1078 }
 0x294   : > { %1080 = vst.msk [vmem:[%s245_s21] sm:$0xff] %vm1073_vm15, %v1079_v37 }
 0x295 PF: > { %s16_s18 = sadd.s32 1, %s1304_s18  }
 0x296   : > { %p13_p4 = scmp.ge.s32.totalorder %s16_s18, 4  }
 0x298   :  { %15 = sbr.rel (!%p13_p4) target bundleno = 1 (0x1), region = 94 }

</bundles_post_ra>
